<compile_context>
chip_gen: v6e
topology: v6e:2x2x1
jax: 0.10.0
libtpu: 0.0.40
codegen_flags: <defaults>
</compile_context>

<pallas_src>
import math

import jax
import jax.numpy as jnp
from jax.experimental import pallas as pl
from jax.experimental.pallas import tpu as pltpu


def _zero_kernel(x_ref, o_ref):
    # Exactly torch's x.mul(0.0): preserves NaN/Inf -> NaN semantics.
    o_ref[...] = x_ref[...] * jnp.asarray(0.0, dtype=x_ref.dtype)


_LANE_CANDIDATES = (8192, 4096, 2048, 1024, 512, 256, 128)


def _native_sublane(itemsize):
    """Native sublane tile height for the packed dtype."""
    return {4: 8, 2: 16, 1: 32}.get(itemsize, 8)


def _round_up(n, m):
    return ((n + m - 1) // m) * m


def _pick_lane_width(total, sub):
    """Largest lane width (multiple of 128) dividing `total`, preferring one
    that also leaves the row count a multiple of the native sublane tile."""
    for cand in _LANE_CANDIDATES:
        if total % cand == 0 and (total // cand) % sub == 0:
            return cand
    for cand in _LANE_CANDIDATES:
        if total % cand == 0:
            return cand
    return None


def _block_and_vmem_budget():
    """(target block bytes, scoped VMEM limit) per TPU generation."""
    cap = None
    try:
        cap = getattr(pltpu.get_tpu_info(), "vmem_capacity_bytes", None)
    except Exception:
        cap = None
    if cap is not None and cap >= (96 << 20):
        # v5e / v6e: 128 MiB physical VMEM.  8 MiB blocks -> 32 MiB of
        # double-buffered in+out; raise the scoped limit well above that.
        return 8 << 20, 48 << 20
    # v7x (64 MiB physical per TC) or unknown generation: stay conservative.
    # 4 MiB blocks -> 16 MiB buffers, comfortably under a 28 MiB limit.
    return 4 << 20, 28 << 20


def zero_forward(x):
    """y = x * 0.0 via a Pallas TPU kernel. Works for any shape/dtype."""
    orig_shape = x.shape
    orig_dtype = x.dtype
    total = math.prod(orig_shape) if len(orig_shape) > 0 else 1
    if total == 0:
        return jnp.zeros(orig_shape, orig_dtype)

    itemsize = jnp.dtype(orig_dtype).itemsize
    sub = _native_sublane(itemsize)

    flat = x.reshape(total)
    padded_total = total
    lane = _pick_lane_width(total, sub)
    if lane is None:
        # Ragged total (not a multiple of 128): pad up to a full native tile
        # (sub x 128) and run the normal tiled, lane-dense path; slice back
        # at the end.  Keeps full-vreg unmasked stores and double-buffering.
        tile = sub * 128
        padded_total = _round_up(total, tile)
        flat = jnp.pad(flat, (0, padded_total - total))
        lane = _pick_lane_width(padded_total, sub)

    rows = padded_total // lane
    x2d = flat.reshape(rows, lane)

    block_bytes, vmem_limit = _block_and_vmem_budget()
    max_br = max(sub, (block_bytes // (lane * itemsize)) // sub * sub)

    if rows <= sub:
        # Tiny array: one full-extent block (block == full array dims is
        # always legal, even when rows isn't a multiple of the sublane tile).
        br = rows
    else:
        br = min(max_br, _round_up(rows, sub))
        # Keep at least two grid steps so the "parallel" axis can actually be
        # sharded across v7x's two TensorCores (harmless on v5e/v6e).
        if pl.cdiv(rows, br) < 2:
            br = max(sub, _round_up(pl.cdiv(rows, 2), sub))
    grid_r = pl.cdiv(rows, br)  # partial last block is masked by Pallas

    out2d = pl.pallas_call(
        _zero_kernel,
        out_shape=jax.ShapeDtypeStruct((rows, lane), orig_dtype),
        grid_spec=pltpu.PrefetchScalarGridSpec(
            num_scalar_prefetch=0,
            grid=(grid_r,),
            in_specs=[pl.BlockSpec((br, lane), lambda i: (i, 0))],
            out_specs=pl.BlockSpec((br, lane), lambda i: (i, 0)),
        ),
        compiler_params=pltpu.CompilerParams(
            # No reduction axis -> safe to shard across v7x's 2 TensorCores.
            dimension_semantics=("parallel",),
            vmem_limit_bytes=vmem_limit,
        ),
        cost_estimate=pl.CostEstimate(
            flops=padded_total,
            transcendentals=0,
            bytes_accessed=2 * padded_total * itemsize,
        ),
    )(x2d)

    out_flat = out2d.reshape(padded_total)
    if padded_total != total:
        out_flat = out_flat[:total]
    return out_flat.reshape(orig_shape)


if __name__ == "__main__":
    key = jax.random.PRNGKey(0)
    # Small NCHW-shaped input consistent with conv-style modules in this repo.
    x = jax.random.normal(key, (2, 4, 16, 16), dtype=jnp.float32)
    y = jax.block_until_ready(zero_forward(x))
    assert y.shape == x.shape
    assert y.dtype == x.dtype
    assert bool(jnp.all(y == 0.0))

    # Ragged total (not a multiple of 128): exercises the pad-and-tile path.
    x2 = jax.random.normal(jax.random.PRNGKey(1), (3, 5, 7), dtype=jnp.float32)
    y2 = jax.block_until_ready(zero_forward(x2))
    assert y2.shape == x2.shape and bool(jnp.all(y2 == 0.0))

    # rows % block_rows != 0: exercises partial-last-block output masking.
    x3 = jax.random.normal(jax.random.PRNGKey(2), (9, 128), dtype=jnp.float32)
    y3 = jax.block_until_ready(zero_forward(x3))
    assert y3.shape == x3.shape and bool(jnp.all(y3 == 0.0))

    # bf16 path (dtype-aware sublane tiling).
    x4 = jax.random.normal(jax.random.PRNGKey(3), (2, 16, 128)).astype(jnp.bfloat16)
    y4 = jax.block_until_ready(zero_forward(x4))
    assert y4.dtype == jnp.bfloat16 and bool(jnp.all(y4 == 0))

    # NaN/Inf propagation matches torch's x.mul(0.0).
    x5 = jnp.array([[float("nan"), float("inf"), -1.0, 2.0]] * 8, jnp.float32)
    y5 = jax.block_until_ready(zero_forward(x5))
    assert bool(jnp.isnan(y5[0, 0])) and bool(jnp.isnan(y5[0, 1]))
    assert bool(jnp.all(y5[:, 2:] == 0.0))

    print("KERNEL_OK")
</pallas_src>

<mosaic_0001>
module attributes {stable_mosaic.version = 11 : i64} {
  func.func @_zero_kernel(%arg0: i32, %arg1: memref<8x256xf32, #tpu.memory_space<vmem>>, %arg2: memref<8x256xf32, #tpu.memory_space<vmem>>) attributes {dimension_semantics = [#tpu.dimension_semantics<parallel>], iteration_bounds = array<i64: 1>, scalar_prefetch = 0 : i64, scratch_operands = 0 : i64, tpu.core_type = #tpu.core_type<tc>, window_params = [{transform_indices = @transform_0, window_bounds = array<i64: 8, 256>}, {transform_indices = @transform_1, window_bounds = array<i64: 8, 256>}]} {
    %c0 = arith.constant 0 : index
    %c0_0 = arith.constant 0 : index
    %0 = vector.load %arg1[%c0, %c0_0] : memref<8x256xf32, #tpu.memory_space<vmem>>, vector<8x256xf32>
    %cst = arith.constant 0.000000e+00 : f32
    %1 = vector.broadcast %cst : f32 to vector<8x256xf32>
    %2 = arith.mulf %0, %1 : vector<8x256xf32>
    %c0_1 = arith.constant 0 : index
    %c0_2 = arith.constant 0 : index
    %3 = vector.load %arg2[%c0_1, %c0_2] : memref<8x256xf32, #tpu.memory_space<vmem>>, vector<8x256xf32>
    tpu.vector_store %arg2[%c0_1, %c0_2], %2 {strides = array<i32>} : memref<8x256xf32, #tpu.memory_space<vmem>>, vector<8x256xf32>,
    return
  }
  func.func @transform_0(%arg0: i32) -> (i32, i32) {
    %c0_i32 = arith.constant 0 : i32
    %c0_i32_0 = arith.constant 0 : i32
    return %arg0, %c0_i32 : i32, i32
  }
  func.func @transform_1(%arg0: i32) -> (i32, i32) {
    %c0_i32 = arith.constant 0 : i32
    %c0_i32_0 = arith.constant 0 : i32
    return %arg0, %c0_i32 : i32, i32
  }
}

</mosaic_0001>

<bundles_post_ra>
// kernel: tpu_custom_call.1
= control target key start
LH: loop header
LB: loop body
LE: loop exit
PB: predicated region body
PF: predicated region fallthrough
CT: control target
= control target key end

     0   :  { %6 = vsyncpa [#allocation3], 0  ;;  %s106_s0 = inlined_call_operand.hbm [shape: f32[8,256], index: 0, kind: input, shape index: {}]   ;;  %s107_s1 = inlined_call_operand.hbm [shape: f32[8,256], index: 1, kind: output, shape index: {}]  }
   0x1   :  { %7 = vsyncpa [#allocation4], 0  ;;  %s88_s6 = smov [#allocation2]  }
   0x2   :  { %s14_s7 = sshll.u32 %s88_s6, 4  ;;  %s15_s7 = int_to_ptr.vmem [resolvable:$true] %s14_s7 }
   0x3   :  { %s52_s8 = scalar_lea.vmem %s15_s7, 256  ;;  %p57_p1 = scmp.lt.s32.totalorder %s15_s7, %s15_s7 }
   0x4   :  { %p53_p0 = scmp.ne.s32.totalorder %s15_s7, %s52_s8  ;;  %p58_p2 = scmp.lt.s32.totalorder %s52_s8, %s52_s8 }
   0x6   :  { %p59_p3 = por %p58_p2, %p57_p1 }
   0x8   :  { %p60_p4 = pnand %p59_p3, %p53_p0 }
   0xa   :  { %63 = shalt.err (!%p60_p4)
}
   0xb   :  { %17 = dma.hbm_to_vmem [thread:$0]  %s106_s0, 256, %s15_s7, [#allocation3]  }
   0xc   :  { %84 = dma.done.wait [#allocation3], 256  }
   0xd   :  { %85 = vsyncadd [#allocation3], 4294967040  ;;  %s89_s11 = smov [#allocation5]   ;;  %v21_v0 = vld [vmem:[#allocation2] sm:$0xff]  ;;  %v22_v1 = vld [vmem:[#allocation2 + $0x8] sm:$0xff] }
   0xe   :  { %s33_s12 = sshll.u32 %s89_s11, 4  ;;  %v23_v2 = vmul.f32 0.0, %v21_v0  ;;  %v24_v3 = vmul.f32 0.0, %v22_v1  ;;  %s34_s12 = int_to_ptr.vmem [resolvable:$true] %s33_s12 }
   0xf   :  { %s64_s13 = scalar_lea.vmem %s34_s12, 256  ;;  %p69_p6 = scmp.lt.s32.totalorder %s34_s12, %s34_s12 }
  0x10   :  { %25 = vst [vmem:[#allocation5] sm:$0xff] %v23_v2  ;;  %26 = vst [vmem:[#allocation5 + $0x8] sm:$0xff] %v24_v3  ;;  %p65_p5 = scmp.ne.s32.totalorder %s34_s12, %s64_s13  ;;  %p70_p7 = scmp.lt.s32.totalorder %s64_s13, %s64_s13 }
  0x12   :  { %p71_p8 = por %p70_p7, %p69_p6 }
  0x14   :  { %p72_p9 = pnand %p71_p8, %p65_p5 }
  0x16   :  { %75 = shalt.err (!%p72_p9)
}
  0x17   :  { %36 = dma.vmem_to_hbm [thread:$0]  %s34_s12, 256, %s107_s1, [#allocation4]  }
  0x18   :  { %86 = dma.done.wait [#allocation4], 256  }
  0x19   :  { %87 = vsyncadd [#allocation4], 4294967040 }
  0x1a   :  { %40 = vsyncpa [#allocation3], 1 }
  0x1b   :  { %41 = vsyncpa [#allocation4], 1 }

</bundles_post_ra>
